<compile_context>
chip_gen: v7x
topology: tpu7x:2x2x1
jax: 0.10.0
libtpu: 0.0.40
codegen_flags: <defaults>
</compile_context>

<pallas_src>
import functools

import jax
import jax.numpy as jnp
from jax.experimental import pallas as pl
from jax.experimental.pallas import tpu as pltpu


def _round_up(x, m):
    return ((x + m - 1) // m) * m


def _l2loss_kernel(pred_ref, gt_ref, dsum_ref, msum_ref, *,
                   max_depth, t_valid, n_cols, tn, nk, needs_mask):
    """One (TB, TN) block: accumulate per-lane partial sums into the outputs.

    Outputs dsum/msum are (TB, 128) blocks resident across the reduction axis
    (grid axis 2); they hold per-row, per-lane partial sums of diff^2 and of
    the valid-pixel count.  The final 128-lane reduce happens in the wrapper.
    """
    k = pl.program_id(2)

    @pl.when(k == 0)
    def _init():
        dsum_ref[...] = jnp.zeros_like(dsum_ref)
        msum_ref[...] = jnp.zeros_like(msum_ref)

    tb = dsum_ref.shape[0]
    n_groups = tn // 128

    dacc = jnp.zeros((tb, 128), jnp.float32)
    macc = jnp.zeros((tb, 128), jnp.float32)

    if needs_mask:
        p = pl.program_id(1)
        col0 = (p * nk + k) * tn                       # logical start column
        lane = jax.lax.broadcasted_iota(jnp.int32, (tb, 128), 1)

    # Pure-VPU inner loop over 128-lane column groups (static, aligned slices
    # of the block refs -> no relayout, no per-step XLU reduce).
    for g in range(n_groups):
        cols = slice(g * 128, (g + 1) * 128)
        gt = jnp.clip(gt_ref[:, cols].astype(jnp.float32), 0.0, max_depth)
        pr = jnp.clip(pred_ref[:, cols].astype(jnp.float32), 0.0, max_depth)
        valid = gt > t_valid
        if needs_mask:
            valid = jnp.logical_and(valid, (col0 + (g * 128) + lane) < n_cols)
        diff = pr - gt
        # jnp.where (select) so garbage/NaN tail data never reaches the sums.
        dacc = dacc + jnp.where(valid, diff * diff, 0.0)
        macc = macc + jnp.where(valid, 1.0, 0.0)

    dsum_ref[...] += dacc
    msum_ref[...] += macc


def l2_loss(pred, gt, max_depth, t_valid=0.0001):
    """pred, gt: (B, C, H, W) (any dtype). Returns scalar float32 loss."""
    assert pred.shape == gt.shape
    assert pred.ndim >= 2
    B = int(pred.shape[0])
    N = 1
    for s in pred.shape[1:]:
        N *= int(s)

    pred2d = pred.reshape(B, N)
    gt2d = gt.reshape(B, N)

    LANE = 128
    packing = max(4 // jnp.dtype(pred2d.dtype).itemsize,
                  4 // jnp.dtype(gt2d.dtype).itemsize, 1)
    SUB = 8 * packing                      # sublane multiple for this dtype

    # Row tile: multiple of SUB, <= 128; prefer >= 2 batch blocks (megacore).
    TB = min(128, _round_up(B, SUB))
    if pl.cdiv(B, TB) < 2 and B > SUB:
        TB = _round_up(pl.cdiv(B, 2), SUB)

    # Column tile: multiple of 128 lanes, <= 8192 (4 MiB f32 per input tile).
    TN = min(8192, _round_up(N, LANE))

    nb = pl.cdiv(B, TB)                    # batch blocks
    NK = pl.cdiv(N, TN)                    # total column blocks
    # Small batch -> split the reduction into P = 2 parallel column chunks so
    # both v7x TensorCores get work (v5e/v6e: harmless extra parallel axis).
    P = 2 if (nb == 1 and NK >= 2) else 1
    nk = pl.cdiv(NK, P)                    # reduction steps per chunk

    # Column masking only needed if some block sees logical columns >= N
    # (ragged last block, or duplicated clamped block when P * nk > NK).
    needs_mask = (N % TN != 0) or (P * nk != NK)

    kernel = functools.partial(
        _l2loss_kernel, max_depth=float(max_depth), t_valid=float(t_valid),
        n_cols=N, tn=TN, nk=nk, needs_mask=needs_mask)

    def in_map(i, p, k):
        # Clamp duplicated tail blocks back in range; their logical columns
        # are >= N and get masked out inside the kernel.
        return (i, jnp.minimum(p * nk + k, NK - 1))

    def out_map(i, p, k):
        return (i, p)

    in_itemsize = (jnp.dtype(pred2d.dtype).itemsize
                   + jnp.dtype(gt2d.dtype).itemsize)
    # 2 inputs x 2 pipeline buffers + headroom for intermediates/outputs,
    # capped at 48 MiB (v7x has only 64 MiB physical VMEM per TensorCore).
    vmem_limit = int(min(48 * 1024 * 1024,
                         max(16 * 1024 * 1024,
                             2 * TB * TN * in_itemsize + (8 << 20))))

    cost = pl.CostEstimate(
        flops=11 * B * N,
        transcendentals=0,
        bytes_accessed=B * N * in_itemsize + 2 * B * P * 128 * 4,
    )

    dsum, msum = pl.pallas_call(
        kernel,
        out_shape=[jax.ShapeDtypeStruct((B, P * 128), jnp.float32),
                   jax.ShapeDtypeStruct((B, P * 128), jnp.float32)],
        grid_spec=pltpu.PrefetchScalarGridSpec(
            num_scalar_prefetch=0,
            grid=(nb, P, nk),
            in_specs=[pl.BlockSpec((TB, TN), in_map),
                      pl.BlockSpec((TB, TN), in_map)],
            out_specs=[pl.BlockSpec((TB, 128), out_map),
                       pl.BlockSpec((TB, 128), out_map)],
        ),
        compiler_params=pltpu.CompilerParams(
            dimension_semantics=("parallel", "parallel", "arbitrary"),
            vmem_limit_bytes=vmem_limit,
        ),
        cost_estimate=cost,
    )(pred2d, gt2d)

    # Tiny epilogue in XLA: final lane reduce, divide, batch sum.
    d = jnp.sum(dsum, axis=1)
    num_valid = jnp.sum(msum, axis=1)
    return jnp.sum(d / (num_valid + 1e-8))


def l2_loss_ref(pred, gt, max_depth, t_valid=0.0001):
    gt = jnp.clip(gt.astype(jnp.float32), 0.0, max_depth)
    pred = jnp.clip(pred.astype(jnp.float32), 0.0, max_depth)
    mask = (gt > t_valid).astype(jnp.float32)
    d = jnp.sum((pred - gt) ** 2 * mask, axis=(1, 2, 3))
    num_valid = jnp.sum(mask, axis=(1, 2, 3))
    return jnp.sum(d / (num_valid + 1e-8))


if __name__ == "__main__":
    key = jax.random.PRNGKey(0)
    max_depth = 10.0
    ks = jax.random.split(key, 8)

    # Test 1: small spec-sized, fully aligned shapes (single grid step).
    B, C, H, W = 2, 4, 16, 16
    pred = jax.random.uniform(ks[0], (B, C, H, W), jnp.float32, -1.0, max_depth + 2.0)
    gt = jax.random.uniform(ks[1], (B, C, H, W), jnp.float32, -1.0, max_depth + 2.0)
    loss = jax.block_until_ready(l2_loss(pred, gt, max_depth))
    ref = l2_loss_ref(pred, gt, max_depth)
    assert jnp.allclose(loss, ref, rtol=1e-5, atol=1e-5), (loss, ref)

    # Test 2: unaligned B and N -> partial batch blocks + in-kernel column tail mask.
    B2, C2, H2, W2 = 10, 3, 33, 29
    pred2 = jax.random.uniform(ks[2], (B2, C2, H2, W2), jnp.float32, -1.0, max_depth + 2.0)
    gt2 = jax.random.uniform(ks[3], (B2, C2, H2, W2), jnp.float32, -1.0, max_depth + 2.0)
    loss2 = jax.block_until_ready(l2_loss(pred2, gt2, max_depth))
    ref2 = l2_loss_ref(pred2, gt2, max_depth)
    assert jnp.allclose(loss2, ref2, rtol=1e-5, atol=1e-5), (loss2, ref2)

    # Test 3: N > TN -> multi-step reduction, P=2 parallel column chunks
    # (v7x megacore path) and a ragged last column block.  N = 25600.
    B3, C3, H3, W3 = 2, 1, 160, 160
    pred3 = jax.random.uniform(ks[4], (B3, C3, H3, W3), jnp.float32, -1.0, max_depth + 2.0)
    gt3 = jax.random.uniform(ks[5], (B3, C3, H3, W3), jnp.float32, -1.0, max_depth + 2.0)
    loss3 = jax.block_until_ready(l2_loss(pred3, gt3, max_depth))
    ref3 = l2_loss_ref(pred3, gt3, max_depth)
    assert jnp.allclose(loss3, ref3, rtol=1e-5, atol=1e-5), (loss3, ref3)

    # Test 4: bf16 inputs streamed natively (TB rounds to the 16-row sublane pack).
    B4, C4, H4, W4 = 4, 4, 32, 32
    pred4 = jax.random.uniform(ks[6], (B4, C4, H4, W4), jnp.float32, -1.0,
                               max_depth + 2.0).astype(jnp.bfloat16)
    gt4 = jax.random.uniform(ks[7], (B4, C4, H4, W4), jnp.float32, -1.0,
                             max_depth + 2.0).astype(jnp.bfloat16)
    loss4 = jax.block_until_ready(l2_loss(pred4, gt4, max_depth))
    ref4 = l2_loss_ref(pred4, gt4, max_depth)
    assert jnp.allclose(loss4, ref4, rtol=1e-4, atol=1e-4), (loss4, ref4)

    print("KERNEL_OK")
</pallas_src>

<mosaic_0001>
module attributes {stable_mosaic.version = 11 : i64} {
  func.func @_l2loss_kernel(%arg0: i32, %arg1: i32, %arg2: i32, %arg3: memref<8x1024xf32, #tpu.memory_space<vmem>>, %arg4: memref<8x1024xf32, #tpu.memory_space<vmem>>, %arg5: memref<8x128xf32, #tpu.memory_space<vmem>>, %arg6: memref<8x128xf32, #tpu.memory_space<vmem>>) attributes {dimension_semantics = [#tpu.dimension_semantics<parallel>, #tpu.dimension_semantics<parallel>, #tpu.dimension_semantics<arbitrary>], iteration_bounds = array<i64: 1, 1, 1>, scalar_prefetch = 0 : i64, scratch_operands = 0 : i64, tpu.core_type = #tpu.core_type<tc>, window_params = [{transform_indices = @transform_0, window_bounds = array<i64: 8, 1024>}, {transform_indices = @transform_1, window_bounds = array<i64: 8, 1024>}, {transform_indices = @transform_2, window_bounds = array<i64: 8, 128>}, {transform_indices = @transform_3, window_bounds = array<i64: 8, 128>}]} {
    %c0_i32 = arith.constant 0 : i32
    %0 = arith.cmpi eq, %arg2, %c0_i32 : i32
    %1 = arith.extui %0 : i1 to i32
    %c0_i32_0 = arith.constant 0 : i32
    %2 = arith.cmpi ne, %1, %c0_i32_0 : i32
    scf.if %2 {
      %cst_98 = arith.constant 0.000000e+00 : f32
      %179 = vector.broadcast %cst_98 : f32 to vector<8x128xf32>
      %c0_99 = arith.constant 0 : index
      %c0_100 = arith.constant 0 : index
      %180 = vector.load %arg5[%c0_99, %c0_100] : memref<8x128xf32, #tpu.memory_space<vmem>>, vector<8x128xf32>
      tpu.vector_store %arg5[%c0_99, %c0_100], %179 {strides = array<i32>} : memref<8x128xf32, #tpu.memory_space<vmem>>, vector<8x128xf32>,
      %cst_101 = arith.constant 0.000000e+00 : f32
      %181 = vector.broadcast %cst_101 : f32 to vector<8x128xf32>
      %c0_102 = arith.constant 0 : index
      %c0_103 = arith.constant 0 : index
      %182 = vector.load %arg6[%c0_102, %c0_103] : memref<8x128xf32, #tpu.memory_space<vmem>>, vector<8x128xf32>
      tpu.vector_store %arg6[%c0_102, %c0_103], %181 {strides = array<i32>} : memref<8x128xf32, #tpu.memory_space<vmem>>, vector<8x128xf32>,
    } else {
    }
    %cst = arith.constant 0.000000e+00 : f32
    %3 = vector.broadcast %cst : f32 to vector<8x128xf32>
    %cst_1 = arith.constant 0.000000e+00 : f32
    %4 = vector.broadcast %cst_1 : f32 to vector<8x128xf32>
    %c0 = arith.constant 0 : index
    %c0_2 = arith.constant 0 : index
    %5 = vector.load %arg4[%c0, %c0_2] : memref<8x1024xf32, #tpu.memory_space<vmem>>, vector<8x128xf32>
    %cst_3 = arith.constant 0.000000e+00 : f32
    %cst_4 = arith.constant 1.000000e+01 : f32
    %6 = vector.broadcast %cst_3 : f32 to vector<8x128xf32>
    %7 = arith.maximumf %6, %5 : vector<8x128xf32>
    %8 = vector.broadcast %cst_4 : f32 to vector<8x128xf32>
    %9 = arith.minimumf %8, %7 : vector<8x128xf32>
    %c0_5 = arith.constant 0 : index
    %c0_6 = arith.constant 0 : index
    %10 = vector.load %arg3[%c0_5, %c0_6] : memref<8x1024xf32, #tpu.memory_space<vmem>>, vector<8x128xf32>
    %cst_7 = arith.constant 0.000000e+00 : f32
    %cst_8 = arith.constant 1.000000e+01 : f32
    %11 = vector.broadcast %cst_7 : f32 to vector<8x128xf32>
    %12 = arith.maximumf %11, %10 : vector<8x128xf32>
    %13 = vector.broadcast %cst_8 : f32 to vector<8x128xf32>
    %14 = arith.minimumf %13, %12 : vector<8x128xf32>
    %cst_9 = arith.constant 9.99999974E-5 : f32
    %15 = vector.broadcast %cst_9 : f32 to vector<8x128xf32>
    %16 = arith.cmpf ogt, %9, %15 : vector<8x128xf32>
    %17 = arith.subf %14, %9 : vector<8x128xf32>
    %18 = arith.mulf %17, %17 : vector<8x128xf32>
    %cst_10 = arith.constant 0.000000e+00 : f32
    %19 = vector.broadcast %cst_10 : f32 to vector<8x128xf32>
    %20 = arith.select %16, %18, %19 : vector<8x128xi1>, vector<8x128xf32>
    %21 = arith.addf %3, %20 : vector<8x128xf32>
    %cst_11 = arith.constant 1.000000e+00 : f32
    %cst_12 = arith.constant 0.000000e+00 : f32
    %22 = vector.broadcast %cst_11 : f32 to vector<8x128xf32>
    %23 = vector.broadcast %cst_12 : f32 to vector<8x128xf32>
    %24 = arith.select %16, %22, %23 : vector<8x128xi1>, vector<8x128xf32>
    %25 = arith.addf %4, %24 : vector<8x128xf32>
    %c0_13 = arith.constant 0 : index
    %c128 = arith.constant 128 : index
    %26 = vector.load %arg4[%c0_13, %c128] : memref<8x1024xf32, #tpu.memory_space<vmem>>, vector<8x128xf32>
    %cst_14 = arith.constant 0.000000e+00 : f32
    %cst_15 = arith.constant 1.000000e+01 : f32
    %27 = vector.broadcast %cst_14 : f32 to vector<8x128xf32>
    %28 = arith.maximumf %27, %26 : vector<8x128xf32>
    %29 = vector.broadcast %cst_15 : f32 to vector<8x128xf32>
    %30 = arith.minimumf %29, %28 : vector<8x128xf32>
    %c0_16 = arith.constant 0 : index
    %c128_17 = arith.constant 128 : index
    %31 = vector.load %arg3[%c0_16, %c128_17] : memref<8x1024xf32, #tpu.memory_space<vmem>>, vector<8x128xf32>
    %cst_18 = arith.constant 0.000000e+00 : f32
    %cst_19 = arith.constant 1.000000e+01 : f32
    %32 = vector.broadcast %cst_18 : f32 to vector<8x128xf32>
    %33 = arith.maximumf %32, %31 : vector<8x128xf32>
    %34 = vector.broadcast %cst_19 : f32 to vector<8x128xf32>
    %35 = arith.minimumf %34, %33 : vector<8x128xf32>
    %cst_20 = arith.constant 9.99999974E-5 : f32
    %36 = vector.broadcast %cst_20 : f32 to vector<8x128xf32>
    %37 = arith.cmpf ogt, %30, %36 : vector<8x128xf32>
    %38 = arith.subf %35, %30 : vector<8x128xf32>
    %39 = arith.mulf %38, %38 : vector<8x128xf32>
    %cst_21 = arith.constant 0.000000e+00 : f32
    %40 = vector.broadcast %cst_21 : f32 to vector<8x128xf32>
    %41 = arith.select %37, %39, %40 : vector<8x128xi1>, vector<8x128xf32>
    %42 = arith.addf %21, %41 : vector<8x128xf32>
    %cst_22 = arith.constant 1.000000e+00 : f32
    %cst_23 = arith.constant 0.000000e+00 : f32
    %43 = vector.broadcast %cst_22 : f32 to vector<8x128xf32>
    %44 = vector.broadcast %cst_23 : f32 to vector<8x128xf32>
    %45 = arith.select %37, %43, %44 : vector<8x128xi1>, vector<8x128xf32>
    %46 = arith.addf %25, %45 : vector<8x128xf32>
    %c0_24 = arith.constant 0 : index
    %c256 = arith.constant 256 : index
    %47 = vector.load %arg4[%c0_24, %c256] : memref<8x1024xf32, #tpu.memory_space<vmem>>, vector<8x128xf32>
    %cst_25 = arith.constant 0.000000e+00 : f32
    %cst_26 = arith.constant 1.000000e+01 : f32
    %48 = vector.broadcast %cst_25 : f32 to vector<8x128xf32>
    %49 = arith.maximumf %48, %47 : vector<8x128xf32>
    %50 = vector.broadcast %cst_26 : f32 to vector<8x128xf32>
    %51 = arith.minimumf %50, %49 : vector<8x128xf32>
    %c0_27 = arith.constant 0 : index
    %c256_28 = arith.constant 256 : index
    %52 = vector.load %arg3[%c0_27, %c256_28] : memref<8x1024xf32, #tpu.memory_space<vmem>>, vector<8x128xf32>
    %cst_29 = arith.constant 0.000000e+00 : f32
    %cst_30 = arith.constant 1.000000e+01 : f32
    %53 = vector.broadcast %cst_29 : f32 to vector<8x128xf32>
    %54 = arith.maximumf %53, %52 : vector<8x128xf32>
    %55 = vector.broadcast %cst_30 : f32 to vector<8x128xf32>
    %56 = arith.minimumf %55, %54 : vector<8x128xf32>
    %cst_31 = arith.constant 9.99999974E-5 : f32
    %57 = vector.broadcast %cst_31 : f32 to vector<8x128xf32>
    %58 = arith.cmpf ogt, %51, %57 : vector<8x128xf32>
    %59 = arith.subf %56, %51 : vector<8x128xf32>
    %60 = arith.mulf %59, %59 : vector<8x128xf32>
    %cst_32 = arith.constant 0.000000e+00 : f32
    %61 = vector.broadcast %cst_32 : f32 to vector<8x128xf32>
    %62 = arith.select %58, %60, %61 : vector<8x128xi1>, vector<8x128xf32>
    %63 = arith.addf %42, %62 : vector<8x128xf32>
    %cst_33 = arith.constant 1.000000e+00 : f32
    %cst_34 = arith.constant 0.000000e+00 : f32
    %64 = vector.broadcast %cst_33 : f32 to vector<8x128xf32>
    %65 = vector.broadcast %cst_34 : f32 to vector<8x128xf32>
    %66 = arith.select %58, %64, %65 : vector<8x128xi1>, vector<8x128xf32>
    %67 = arith.addf %46, %66 : vector<8x128xf32>
    %c0_35 = arith.constant 0 : index
    %c384 = arith.constant 384 : index
    %68 = vector.load %arg4[%c0_35, %c384] : memref<8x1024xf32, #tpu.memory_space<vmem>>, vector<8x128xf32>
    %cst_36 = arith.constant 0.000000e+00 : f32
    %cst_37 = arith.constant 1.000000e+01 : f32
    %69 = vector.broadcast %cst_36 : f32 to vector<8x128xf32>
    %70 = arith.maximumf %69, %68 : vector<8x128xf32>
    %71 = vector.broadcast %cst_37 : f32 to vector<8x128xf32>
    %72 = arith.minimumf %71, %70 : vector<8x128xf32>
    %c0_38 = arith.constant 0 : index
    %c384_39 = arith.constant 384 : index
    %73 = vector.load %arg3[%c0_38, %c384_39] : memref<8x1024xf32, #tpu.memory_space<vmem>>, vector<8x128xf32>
    %cst_40 = arith.constant 0.000000e+00 : f32
    %cst_41 = arith.constant 1.000000e+01 : f32
    %74 = vector.broadcast %cst_40 : f32 to vector<8x128xf32>
    %75 = arith.maximumf %74, %73 : vector<8x128xf32>
    %76 = vector.broadcast %cst_41 : f32 to vector<8x128xf32>
    %77 = arith.minimumf %76, %75 : vector<8x128xf32>
    %cst_42 = arith.constant 9.99999974E-5 : f32
    %78 = vector.broadcast %cst_42 : f32 to vector<8x128xf32>
    %79 = arith.cmpf ogt, %72, %78 : vector<8x128xf32>
    %80 = arith.subf %77, %72 : vector<8x128xf32>
    %81 = arith.mulf %80, %80 : vector<8x128xf32>
    %cst_43 = arith.constant 0.000000e+00 : f32
    %82 = vector.broadcast %cst_43 : f32 to vector<8x128xf32>
    %83 = arith.select %79, %81, %82 : vector<8x128xi1>, vector<8x128xf32>
    %84 = arith.addf %63, %83 : vector<8x128xf32>
    %cst_44 = arith.constant 1.000000e+00 : f32
    %cst_45 = arith.constant 0.000000e+00 : f32
    %85 = vector.broadcast %cst_44 : f32 to vector<8x128xf32>
    %86 = vector.broadcast %cst_45 : f32 to vector<8x128xf32>
    %87 = arith.select %79, %85, %86 : vector<8x128xi1>, vector<8x128xf32>
    %88 = arith.addf %67, %87 : vector<8x128xf32>
    %c0_46 = arith.constant 0 : index
    %c512 = arith.constant 512 : index
    %89 = vector.load %arg4[%c0_46, %c512] : memref<8x1024xf32, #tpu.memory_space<vmem>>, vector<8x128xf32>
    %cst_47 = arith.constant 0.000000e+00 : f32
    %cst_48 = arith.constant 1.000000e+01 : f32
    %90 = vector.broadcast %cst_47 : f32 to vector<8x128xf32>
    %91 = arith.maximumf %90, %89 : vector<8x128xf32>
    %92 = vector.broadcast %cst_48 : f32 to vector<8x128xf32>
    %93 = arith.minimumf %92, %91 : vector<8x128xf32>
    %c0_49 = arith.constant 0 : index
    %c512_50 = arith.constant 512 : index
    %94 = vector.load %arg3[%c0_49, %c512_50] : memref<8x1024xf32, #tpu.memory_space<vmem>>, vector<8x128xf32>
    %cst_51 = arith.constant 0.000000e+00 : f32
    %cst_52 = arith.constant 1.000000e+01 : f32
    %95 = vector.broadcast %cst_51 : f32 to vector<8x128xf32>
    %96 = arith.maximumf %95, %94 : vector<8x128xf32>
    %97 = vector.broadcast %cst_52 : f32 to vector<8x128xf32>
    %98 = arith.minimumf %97, %96 : vector<8x128xf32>
    %cst_53 = arith.constant 9.99999974E-5 : f32
    %99 = vector.broadcast %cst_53 : f32 to vector<8x128xf32>
    %100 = arith.cmpf ogt, %93, %99 : vector<8x128xf32>
    %101 = arith.subf %98, %93 : vector<8x128xf32>
    %102 = arith.mulf %101, %101 : vector<8x128xf32>
    %cst_54 = arith.constant 0.000000e+00 : f32
    %103 = vector.broadcast %cst_54 : f32 to vector<8x128xf32>
    %104 = arith.select %100, %102, %103 : vector<8x128xi1>, vector<8x128xf32>
    %105 = arith.addf %84, %104 : vector<8x128xf32>
    %cst_55 = arith.constant 1.000000e+00 : f32
    %cst_56 = arith.constant 0.000000e+00 : f32
    %106 = vector.broadcast %cst_55 : f32 to vector<8x128xf32>
    %107 = vector.broadcast %cst_56 : f32 to vector<8x128xf32>
    %108 = arith.select %100, %106, %107 : vector<8x128xi1>, vector<8x128xf32>
    %109 = arith.addf %88, %108 : vector<8x128xf32>
    %c0_57 = arith.constant 0 : index
    %c640 = arith.constant 640 : index
    %110 = vector.load %arg4[%c0_57, %c640] : memref<8x1024xf32, #tpu.memory_space<vmem>>, vector<8x128xf32>
    %cst_58 = arith.constant 0.000000e+00 : f32
    %cst_59 = arith.constant 1.000000e+01 : f32
    %111 = vector.broadcast %cst_58 : f32 to vector<8x128xf32>
    %112 = arith.maximumf %111, %110 : vector<8x128xf32>
    %113 = vector.broadcast %cst_59 : f32 to vector<8x128xf32>
    %114 = arith.minimumf %113, %112 : vector<8x128xf32>
    %c0_60 = arith.constant 0 : index
    %c640_61 = arith.constant 640 : index
    %115 = vector.load %arg3[%c0_60, %c640_61] : memref<8x1024xf32, #tpu.memory_space<vmem>>, vector<8x128xf32>
    %cst_62 = arith.constant 0.000000e+00 : f32
    %cst_63 = arith.constant 1.000000e+01 : f32
    %116 = vector.broadcast %cst_62 : f32 to vector<8x128xf32>
    %117 = arith.maximumf %116, %115 : vector<8x128xf32>
    %118 = vector.broadcast %cst_63 : f32 to vector<8x128xf32>
    %119 = arith.minimumf %118, %117 : vector<8x128xf32>
    %cst_64 = arith.constant 9.99999974E-5 : f32
    %120 = vector.broadcast %cst_64 : f32 to vector<8x128xf32>
    %121 = arith.cmpf ogt, %114, %120 : vector<8x128xf32>
    %122 = arith.subf %119, %114 : vector<8x128xf32>
    %123 = arith.mulf %122, %122 : vector<8x128xf32>
    %cst_65 = arith.constant 0.000000e+00 : f32
    %124 = vector.broadcast %cst_65 : f32 to vector<8x128xf32>
    %125 = arith.select %121, %123, %124 : vector<8x128xi1>, vector<8x128xf32>
    %126 = arith.addf %105, %125 : vector<8x128xf32>
    %cst_66 = arith.constant 1.000000e+00 : f32
    %cst_67 = arith.constant 0.000000e+00 : f32
    %127 = vector.broadcast %cst_66 : f32 to vector<8x128xf32>
    %128 = vector.broadcast %cst_67 : f32 to vector<8x128xf32>
    %129 = arith.select %121, %127, %128 : vector<8x128xi1>, vector<8x128xf32>
    %130 = arith.addf %109, %129 : vector<8x128xf32>
    %c0_68 = arith.constant 0 : index
    %c768 = arith.constant 768 : index
    %131 = vector.load %arg4[%c0_68, %c768] : memref<8x1024xf32, #tpu.memory_space<vmem>>, vector<8x128xf32>
    %cst_69 = arith.constant 0.000000e+00 : f32
    %cst_70 = arith.constant 1.000000e+01 : f32
    %132 = vector.broadcast %cst_69 : f32 to vector<8x128xf32>
    %133 = arith.maximumf %132, %131 : vector<8x128xf32>
    %134 = vector.broadcast %cst_70 : f32 to vector<8x128xf32>
    %135 = arith.minimumf %134, %133 : vector<8x128xf32>
    %c0_71 = arith.constant 0 : index
    %c768_72 = arith.constant 768 : index
    %136 = vector.load %arg3[%c0_71, %c768_72] : memref<8x1024xf32, #tpu.memory_space<vmem>>, vector<8x128xf32>
    %cst_73 = arith.constant 0.000000e+00 : f32
    %cst_74 = arith.constant 1.000000e+01 : f32
    %137 = vector.broadcast %cst_73 : f32 to vector<8x128xf32>
    %138 = arith.maximumf %137, %136 : vector<8x128xf32>
    %139 = vector.broadcast %cst_74 : f32 to vector<8x128xf32>
    %140 = arith.minimumf %139, %138 : vector<8x128xf32>
    %cst_75 = arith.constant 9.99999974E-5 : f32
    %141 = vector.broadcast %cst_75 : f32 to vector<8x128xf32>
    %142 = arith.cmpf ogt, %135, %141 : vector<8x128xf32>
    %143 = arith.subf %140, %135 : vector<8x128xf32>
    %144 = arith.mulf %143, %143 : vector<8x128xf32>
    %cst_76 = arith.constant 0.000000e+00 : f32
    %145 = vector.broadcast %cst_76 : f32 to vector<8x128xf32>
    %146 = arith.select %142, %144, %145 : vector<8x128xi1>, vector<8x128xf32>
    %147 = arith.addf %126, %146 : vector<8x128xf32>
    %cst_77 = arith.constant 1.000000e+00 : f32
    %cst_78 = arith.constant 0.000000e+00 : f32
    %148 = vector.broadcast %cst_77 : f32 to vector<8x128xf32>
    %149 = vector.broadcast %cst_78 : f32 to vector<8x128xf32>
    %150 = arith.select %142, %148, %149 : vector<8x128xi1>, vector<8x128xf32>
    %151 = arith.addf %130, %150 : vector<8x128xf32>
    %c0_79 = arith.constant 0 : index
    %c896 = arith.constant 896 : index
    %152 = vector.load %arg4[%c0_79, %c896] : memref<8x1024xf32, #tpu.memory_space<vmem>>, vector<8x128xf32>
    %cst_80 = arith.constant 0.000000e+00 : f32
    %cst_81 = arith.constant 1.000000e+01 : f32
    %153 = vector.broadcast %cst_80 : f32 to vector<8x128xf32>
    %154 = arith.maximumf %153, %152 : vector<8x128xf32>
    %155 = vector.broadcast %cst_81 : f32 to vector<8x128xf32>
    %156 = arith.minimumf %155, %154 : vector<8x128xf32>
    %c0_82 = arith.constant 0 : index
    %c896_83 = arith.constant 896 : index
    %157 = vector.load %arg3[%c0_82, %c896_83] : memref<8x1024xf32, #tpu.memory_space<vmem>>, vector<8x128xf32>
    %cst_84 = arith.constant 0.000000e+00 : f32
    %cst_85 = arith.constant 1.000000e+01 : f32
    %158 = vector.broadcast %cst_84 : f32 to vector<8x128xf32>
    %159 = arith.maximumf %158, %157 : vector<8x128xf32>
    %160 = vector.broadcast %cst_85 : f32 to vector<8x128xf32>
    %161 = arith.minimumf %160, %159 : vector<8x128xf32>
    %cst_86 = arith.constant 9.99999974E-5 : f32
    %162 = vector.broadcast %cst_86 : f32 to vector<8x128xf32>
    %163 = arith.cmpf ogt, %156, %162 : vector<8x128xf32>
    %164 = arith.subf %161, %156 : vector<8x128xf32>
    %165 = arith.mulf %164, %164 : vector<8x128xf32>
    %cst_87 = arith.constant 0.000000e+00 : f32
    %166 = vector.broadcast %cst_87 : f32 to vector<8x128xf32>
    %167 = arith.select %163, %165, %166 : vector<8x128xi1>, vector<8x128xf32>
    %168 = arith.addf %147, %167 : vector<8x128xf32>
    %cst_88 = arith.constant 1.000000e+00 : f32
    %cst_89 = arith.constant 0.000000e+00 : f32
    %169 = vector.broadcast %cst_88 : f32 to vector<8x128xf32>
    %170 = vector.broadcast %cst_89 : f32 to vector<8x128xf32>
    %171 = arith.select %163, %169, %170 : vector<8x128xi1>, vector<8x128xf32>
    %172 = arith.addf %151, %171 : vector<8x128xf32>
    %c0_90 = arith.constant 0 : index
    %c0_91 = arith.constant 0 : index
    %173 = vector.load %arg5[%c0_90, %c0_91] : memref<8x128xf32, #tpu.memory_space<vmem>>, vector<8x128xf32>
    %174 = arith.addf %173, %168 : vector<8x128xf32>
    %c0_92 = arith.constant 0 : index
    %c0_93 = arith.constant 0 : index
    %175 = vector.load %arg5[%c0_92, %c0_93] : memref<8x128xf32, #tpu.memory_space<vmem>>, vector<8x128xf32>
    tpu.vector_store %arg5[%c0_92, %c0_93], %174 {strides = array<i32>} : memref<8x128xf32, #tpu.memory_space<vmem>>, vector<8x128xf32>,
    %c0_94 = arith.constant 0 : index
    %c0_95 = arith.constant 0 : index
    %176 = vector.load %arg6[%c0_94, %c0_95] : memref<8x128xf32, #tpu.memory_space<vmem>>, vector<8x128xf32>
    %177 = arith.addf %176, %172 : vector<8x128xf32>
    %c0_96 = arith.constant 0 : index
    %c0_97 = arith.constant 0 : index
    %178 = vector.load %arg6[%c0_96, %c0_97] : memref<8x128xf32, #tpu.memory_space<vmem>>, vector<8x128xf32>
    tpu.vector_store %arg6[%c0_96, %c0_97], %177 {strides = array<i32>} : memref<8x128xf32, #tpu.memory_space<vmem>>, vector<8x128xf32>,
    return
  }
  func.func @transform_0(%arg0: i32, %arg1: i32, %arg2: i32) -> (i32, i32) {
    %c1_i32 = arith.constant 1 : i32
    %0 = arith.muli %arg1, %c1_i32 : i32
    %1 = arith.addi %0, %arg2 : i32
    %c0_i32 = arith.constant 0 : i32
    %2 = arith.minsi %1, %c0_i32 : i32
    %c0_i32_0 = arith.constant 0 : i32
    return %arg0, %2 : i32, i32
  }
  func.func @transform_1(%arg0: i32, %arg1: i32, %arg2: i32) -> (i32, i32) {
    %c1_i32 = arith.constant 1 : i32
    %0 = arith.muli %arg1, %c1_i32 : i32
    %1 = arith.addi %0, %arg2 : i32
    %c0_i32 = arith.constant 0 : i32
    %2 = arith.minsi %1, %c0_i32 : i32
    %c0_i32_0 = arith.constant 0 : i32
    return %arg0, %2 : i32, i32
  }
  func.func @transform_2(%arg0: i32, %arg1: i32, %arg2: i32) -> (i32, i32) {
    %c0_i32 = arith.constant 0 : i32
    return %arg0, %arg1 : i32, i32
  }
  func.func @transform_3(%arg0: i32, %arg1: i32, %arg2: i32) -> (i32, i32) {
    %c0_i32 = arith.constant 0 : i32
    return %arg0, %arg1 : i32, i32
  }
}

</mosaic_0001>

<bundles_post_ra>
// kernel: tpu_custom_call.1
= control target key start
LH: loop header
LB: loop body
LE: loop exit
PB: predicated region body
PF: predicated region fallthrough
CT: control target
= control target key end

     0   :  { %9 = vsyncpa [#allocation3], 0  ;;  %s859_s0 = inlined_call_operand.hbm [shape: f32[2,1024], index: 0, kind: input, shape index: {}]   ;;  %s860_s1 = inlined_call_operand.hbm [shape: f32[2,1024], index: 1, kind: input, shape index: {}]   ;;  %s861_s2 = inlined_call_operand.hbm [shape: f32[2,128], index: 2, kind: output, shape index: {0}]   ;;  %s862_s3 = inlined_call_operand.hbm [shape: f32[2,128], index: 3, kind: output, shape index: {1}]  }
   0x1   :  { %10 = vsyncpa [#allocation6], 0 }
   0x2   :  { %11 = vsyncpa [#allocation4], 0 }
   0x3   :  { %12 = vsyncpa [#allocation9], 0 }
   0x4   :  { %21 = vsyncadd [#allocation3], 768  ;;  %s679_s12 = smov [#allocation2]   ;;  %s583_s16 = scalar_lea.hbm %s859_s0, 256 }
   0x5   :  { %s24_s13 = sshll.u32 %s679_s12, 4  ;;  %p584_p0 = scmp.ne.s32.totalorder %s859_s0, %s583_s16  ;;  %s25_s13 = int_to_ptr.vmem [resolvable:$true] %s24_s13 }
   0x6   :  { %p587_p1 = scmp.lt.u32.totalorder %s583_s16, %s859_s0 }
   0x8   :  { %p589_p2 = pnand %p587_p1, %p584_p0 }
   0xa   :  { %592 = shalt.err (!%p589_p2)
}
   0xb   :  { %s593_s21 = scalar_lea.vmem %s25_s13, 256  ;;  %s597_s22 = scalar_lea.vmem %s25_s13, 1024 }
   0xc   :  { %p594_p3 = scmp.ne.s32.totalorder %s25_s13, %s593_s21  ;;  %p598_p4 = scmp.lt.s32.totalorder %s25_s13, %s25_s13 }
   0xd   :  { %p599_p5 = scmp.lt.s32.totalorder %s597_s22, %s593_s21 }
   0xf   :  { %p600_p6 = por %p599_p5, %p598_p4 }
  0x11   :  { %p601_p7 = pnand %p600_p6, %p594_p3 }
  0x13   :  { %604 = shalt.err (!%p601_p7)
}
  0x14   :  { %s680_s23 = smov 256   ;;  %s681_s24 = smov 16  }
  0x15   :  { %30 = dma.hbm_to_vmem [thread:$0]  %s859_s0, 256, %s25_s13, [#allocation3], %s680_s23, %s680_s23, %s681_s24  }
  0x16   :  { %39 = vsyncadd [#allocation6], 768  ;;  %s682_s27 = smov [#allocation5]   ;;  %s605_s4 = scalar_lea.hbm %s860_s1, 256 }
  0x17   :  { %s42_s28 = sshll.u32 %s682_s27, 4  ;;  %p606_p8 = scmp.ne.s32.totalorder %s860_s1, %s605_s4  ;;  %s43_s28 = int_to_ptr.vmem [resolvable:$true] %s42_s28 }
  0x18   :  { %p609_p9 = scmp.lt.u32.totalorder %s605_s4, %s860_s1 }
  0x1a   :  { %p611_p10 = pnand %p609_p9, %p606_p8 }
  0x1c   :  { %614 = shalt.err (!%p611_p10)
}
  0x1d   :  { %s615_s9 = scalar_lea.vmem %s43_s28, 256  ;;  %s619_s0 = scalar_lea.vmem %s43_s28, 1024 }
  0x1e   :  { %p616_p11 = scmp.ne.s32.totalorder %s43_s28, %s615_s9  ;;  %p620_p12 = scmp.lt.s32.totalorder %s43_s28, %s43_s28 }
  0x1f   :  { %p621_p13 = scmp.lt.s32.totalorder %s619_s0, %s615_s9 }
  0x21   :  { %p622_p0 = por %p621_p13, %p620_p12 }
  0x23   :  { %p623_p1 = pnand %p622_p0, %p616_p11 }
  0x25   :  { %626 = shalt.err (!%p623_p1)
}
  0x26   :  { %48 = dma.hbm_to_vmem [thread:$0]  %s860_s1, 256, %s43_s28, [#allocation6], %s680_s23, %s680_s23, %s681_s24  }
  0x27   :  { %671 = dma.done.wait [#allocation3], 1024  }
  0x28   :  { %672 = vsyncadd [#allocation3], 4294966272 }
  0x29   :  { %673 = dma.done.wait [#allocation6], 1024  }
  0x2a   :  { %674 = vsyncadd [#allocation6], 4294966272  ;;  %v683_v0 = vmov 1983009808   ;;  %v495_v2 = vlaneseq  ;;  %v69_v3 = vld [vmem:[#allocation5] sm:$0x3] }
  0x2b   :  { %v493_v1 = vunpack.c.l.s4 %v683_v0  ;;  %v70_v4 = vld [vmem:[#allocation5 + $0x10] sm:$0x3]  ;;  %v71_v5 = vld [vmem:[#allocation5 + $0x20] sm:$0x3]  ;;  %v73_v7 = vmax.f32 %v69_v3, 0.0  ;;  %v684_v31 = vmov 0.0  }
  0x2c   :  { %v72_v6 = vld [vmem:[#allocation5 + $0x30] sm:$0x3]  ;;  %v74_v8 = vmax.f32 %v70_v4, 0.0  ;;  %v75_v9 = vmax.f32 %v71_v5, 0.0  ;;  %v81_v11 = vld [vmem:[#allocation2] sm:$0x3] }
  0x2d   :  { %v76_v10 = vmax.f32 %v72_v6, 0.0  ;;  %v82_v12 = vld [vmem:[#allocation2 + $0x10] sm:$0x3]  ;;  %v494_v13 = vunpack.c.0.s8 %v493_v1  ;;  %v496_v14 = vshrl.u32 %v495_v2, 7  ;;  %v77_v15 = vmin.f32 %v73_v7, 10.0 }
  0x2e   :  { %v78_v16 = vmin.f32 %v74_v8, 10.0  ;;  %v83_v17 = vld [vmem:[#allocation2 + $0x20] sm:$0x3]  ;;  %v85_v18 = vmax.f32 %v81_v11, 0.0  ;;  %v79_v19 = vmin.f32 %v75_v9, 10.0  ;;  %v86_v22 = vmax.f32 %v82_v12, 0.0 }
  0x2f   :  { %v80_v20 = vmin.f32 %v76_v10, 10.0  ;;  %v84_v21 = vld [vmem:[#allocation2 + $0x30] sm:$0x3]  ;;  %v87_v23 = vmax.f32 %v83_v17, 0.0  ;;  %vm93_vm0 = vcmp.gt.f32.partialorder %v77_v15, 0.0001  ;;  %v733_v28 = vsub.s32 %v494_v13, %v496_v14 }
  0x30   :  { %v88_v24 = vmax.f32 %v84_v21, 0.0  ;;  %v89_v25 = vmin.f32 %v85_v18, 10.0  ;;  %vm94_vm1 = vcmp.gt.f32.partialorder %v78_v16, 0.0001  ;;  %v90_v26 = vmin.f32 %v86_v22, 10.0 }
  0x31   :  { %v91_v27 = vmin.f32 %v87_v23, 10.0  ;;  %vm95_vm2 = vcmp.gt.f32.partialorder %v79_v19, 0.0001  ;;  %vm96_vm3 = vcmp.gt.f32.partialorder %v80_v20, 0.0001  ;;  %v113_v32 = vsel %vm93_vm0, 1.0, %v684_v31 }
  0x32   :  { %v92_v29 = vmin.f32 %v88_v24, 10.0  ;;  %v97_v30 = vsub.f32 %v89_v25, %v77_v15  ;;  %v121_v33 = vld [vmem:[#allocation5 + $0x2] sm:$0x3]  ;;  %v98_v34 = vsub.f32 %v90_v26, %v78_v16  ;;  %v114_v36 = vsel %vm94_vm1, 1.0, %v684_v31  ;;  %v122_v38 = vld [vmem:[#allocation5 + $0x12] sm:$0x3] }
  0x33   :  { %v99_v35 = vsub.f32 %v91_v27, %v79_v19  ;;  %v115_v37 = vsel %vm95_vm2, 1.0, %v684_v31  ;;  %v123_v39 = vld [vmem:[#allocation5 + $0x22] sm:$0x3]  ;;  %v124_v42 = vld [vmem:[#allocation5 + $0x32] sm:$0x3]  ;;  %v125_v43 = vmax.f32 %v121_v33, 0.0 }
  0x34   :  { %v100_v40 = vsub.f32 %v92_v29, %v80_v20  ;;  %v101_v41 = vmul.f32 %v97_v30, %v97_v30  ;;  %v126_v44 = vmax.f32 %v122_v38, 0.0  ;;  %v133_v45 = vld [vmem:[#allocation2 + $0x2] sm:$0x3]  ;;  %v102_v46 = vmul.f32 %v98_v34, %v98_v34  ;;  %v134_v50 = vld [vmem:[#allocation2 + $0x12] sm:$0x3] }
  0x35   :  { %v103_v47 = vmul.f32 %v99_v35, %v99_v35  ;;  %v127_v48 = vmax.f32 %v123_v39, 0.0  ;;  %v128_v49 = vmax.f32 %v124_v42, 0.0  ;;  %v135_v51 = vld [vmem:[#allocation2 + $0x22] sm:$0x3]  ;;  %v116_v54 = vsel %vm96_vm3, 1.0, %v684_v31 }
  0x36   :  { %v104_v52 = vmul.f32 %v100_v40, %v100_v40  ;;  %v105_v53 = vsel %vm93_vm0, %v101_v41, 0.0  ;;  %v129_v55 = vmin.f32 %v125_v43, 10.0  ;;  %v136_v56 = vld [vmem:[#allocation2 + $0x32] sm:$0x3]  ;;  %v106_v57 = vsel %vm94_vm1, %v102_v46, 0.0 }
  0x37   :  { %v107_v58 = vsel %vm95_vm2, %v103_v47, 0.0  ;;  %v130_v59 = vmin.f32 %v126_v44, 10.0  ;;  %v131_v60 = vmin.f32 %v127_v48, 10.0  ;;  %v132_v61 = vmin.f32 %v128_v49, 10.0  ;;  %v173_v1 = vld [vmem:[#allocation5 + $0x4] sm:$0x3] }
  0x38   :  { %v137_v62 = vmax.f32 %v133_v45, 0.0  ;;  %v138_v63 = vmax.f32 %v134_v50, 0.0  ;;  %v139_v0 = vmax.f32 %v135_v51, 0.0  ;;  %v108_v2 = vsel %vm96_vm3, %v104_v52, 0.0  ;;  %v174_v14 = vld [vmem:[#allocation5 + $0x14] sm:$0x3] }
  0x39   :  { %v140_v3 = vmax.f32 %v136_v56, 0.0  ;;  %vm145_vm4 = vcmp.gt.f32.partialorder %v129_v55, 0.0001  ;;  %vm146_vm5 = vcmp.gt.f32.partialorder %v130_v59, 0.0001  ;;  %v177_v20 = vmax.f32 %v173_v1, 0.0 }
  0x3a   :  { %v141_v4 = vmin.f32 %v137_v62, 10.0  ;;  %v142_v5 = vmin.f32 %v138_v63, 10.0  ;;  %v143_v6 = vmin.f32 %v139_v0, 10.0  ;;  %vm147_vm6 = vcmp.gt.f32.partialorder %v131_v60, 0.0001 }
  0x3b   :  { %v144_v7 = vmin.f32 %v140_v3, 10.0  ;;  %vm148_vm7 = vcmp.gt.f32.partialorder %v132_v61, 0.0001  ;;  %v165_v8 = vsel %vm145_vm4, 1.0, %v684_v31  ;;  %v166_v9 = vsel %vm146_vm5, 1.0, %v684_v31 }
  0x3c   :  { %v149_v10 = vsub.f32 %v141_v4, %v129_v55  ;;  %v150_v11 = vsub.f32 %v142_v5, %v130_v59  ;;  %v151_v12 = vsub.f32 %v143_v6, %v131_v60  ;;  %v167_v13 = vsel %vm147_vm6, 1.0, %v684_v31  ;;  %v175_v15 = vld [vmem:[#allocation5 + $0x24] sm:$0x3]  ;;  %v176_v19 = vld [vmem:[#allocation5 + $0x34] sm:$0x3] }
  0x3d   :  { %v152_v16 = vsub.f32 %v144_v7, %v132_v61  ;;  %v168_v17 = vsel %vm148_vm7, 1.0, %v684_v31  ;;  %v169_v18 = vadd.f32 %v165_v8, %v113_v32  ;;  %v170_v24 = vadd.f32 %v166_v9, %v114_v36  ;;  %v185_v30 = vld [vmem:[#allocation2 + $0x4] sm:$0x3]  ;;  %v186_v33 = vld [vmem:[#allocation2 + $0x14] sm:$0x3] }
  0x3e   :  { %v153_v21 = vmul.f32 %v149_v10, %v149_v10  ;;  %v154_v22 = vmul.f32 %v150_v11, %v150_v11  ;;  %v155_v23 = vmul.f32 %v151_v12, %v151_v12  ;;  %v171_v26 = vadd.f32 %v167_v13, %v115_v37  ;;  %v187_v32 = vld [vmem:[#allocation2 + $0x24] sm:$0x3]  ;;  %v188_v36 = vld [vmem:[#allocation2 + $0x34] sm:$0x3]  ;;  %v225_v51 = vld [vmem:[#allocation5 + $0x6] sm:$0x3] }
  0x3f   :  { %v156_v25 = vmul.f32 %v152_v16, %v152_v16  ;;  %v178_v27 = vmax.f32 %v174_v14, 0.0  ;;  %v179_v29 = vmax.f32 %v175_v15, 0.0  ;;  %v180_v39 = vmax.f32 %v176_v19, 0.0  ;;  %v226_v0 = vld [vmem:[#allocation5 + $0x16] sm:$0x3] }
  0x40   :  { %v157_v34 = vsel %vm145_vm4, %v153_v21, 0.0  ;;  %v158_v35 = vsel %vm146_vm5, %v154_v22, 0.0  ;;  %v159_v38 = vsel %vm147_vm6, %v155_v23, 0.0  ;;  %v172_v43 = vadd.f32 %v168_v17, %v116_v54  ;;  %v227_v1 = vld [vmem:[#allocation5 + $0x26] sm:$0x3] }
  0x41   :  { %v160_v40 = vsel %vm148_vm7, %v156_v25, 0.0  ;;  %v161_v41 = vadd.f32 %v157_v34, %v105_v53  ;;  %v162_v42 = vadd.f32 %v158_v35, %v106_v57  ;;  %v163_v44 = vadd.f32 %v159_v38, %v107_v58  ;;  %v228_v5 = vld [vmem:[#allocation5 + $0x36] sm:$0x3]  ;;  %v237_v15 = vld [vmem:[#allocation2 + $0x6] sm:$0x3] }
  0x42   :  { %v164_v37 = vadd.f32 %v160_v40, %v108_v2  ;;  %v181_v45 = vmin.f32 %v177_v20, 10.0  ;;  %v182_v46 = vmin.f32 %v178_v27, 10.0  ;;  %v183_v47 = vmin.f32 %v179_v29, 10.0  ;;  %v238_v16 = vld [vmem:[#allocation2 + $0x16] sm:$0x3] }
  0x43   :  { %v189_v48 = vmax.f32 %v185_v30, 0.0  ;;  %v190_v49 = vmax.f32 %v186_v33, 0.0  ;;  %v191_v50 = vmax.f32 %v187_v32, 0.0  ;;  %v184_v52 = vmin.f32 %v180_v39, 10.0  ;;  %v277_v32 = vld [vmem:[#allocation5 + $0x8] sm:$0x3] }
  0x44   :  { %v192_v55 = vmax.f32 %v188_v36, 0.0  ;;  %vm197_vm8 = vcmp.gt.f32.partialorder %v181_v45, 0.0001  ;;  %vm198_vm9 = vcmp.gt.f32.partialorder %v182_v46, 0.0001  ;;  %v229_v6 = vmax.f32 %v225_v51, 0.0 }
  0x45   :  { %v193_v56 = vmin.f32 %v189_v48, 10.0  ;;  %v194_v59 = vmin.f32 %v190_v49, 10.0  ;;  %v195_v60 = vmin.f32 %v191_v50, 10.0  ;;  %vm199_vm10 = vcmp.gt.f32.partialorder %v183_v47, 0.0001 }
  0x46   :  { %v196_v53 = vmin.f32 %v192_v55, 10.0  ;;  %vm200_vm11 = vcmp.gt.f32.partialorder %v184_v52, 0.0001  ;;  %v217_v54 = vsel %vm197_vm8, 1.0, %v684_v31  ;;  %v218_v57 = vsel %vm198_vm9, 1.0, %v684_v31 }
  0x47   :  { %v201_v58 = vsub.f32 %v193_v56, %v181_v45  ;;  %v202_v61 = vsub.f32 %v194_v59, %v182_v46  ;;  %v203_v62 = vsub.f32 %v195_v60, %v183_v47  ;;  %v219_v63 = vsel %vm199_vm10, 1.0, %v684_v31  ;;  %v278_v50 = vld [vmem:[#allocation5 + $0x18] sm:$0x3]  ;;  %v279_v51 = vld [vmem:[#allocation5 + $0x28] sm:$0x3] }
  0x48   :  { %v204_v2 = vsub.f32 %v196_v53, %v184_v52  ;;  %v220_v3 = vsel %vm200_vm11, 1.0, %v684_v31  ;;  %v221_v4 = vadd.f32 %v217_v54, %v169_v18  ;;  %v222_v10 = vadd.f32 %v218_v57, %v170_v24  ;;  %v239_v18 = vld [vmem:[#allocation2 + $0x26] sm:$0x3]  ;;  %v240_v24 = vld [vmem:[#allocation2 + $0x36] sm:$0x3] }
  0x49   :  { %v205_v7 = vmul.f32 %v201_v58, %v201_v58  ;;  %v206_v8 = vmul.f32 %v202_v61, %v202_v61  ;;  %v207_v9 = vmul.f32 %v203_v62, %v203_v62  ;;  %v223_v12 = vadd.f32 %v219_v63, %v171_v26  ;;  %v280_v59 = vld [vmem:[#allocation5 + $0x38] sm:$0x3] }
  0x4a   :  { %v208_v11 = vmul.f32 %v204_v2, %v204_v2  ;;  %v230_v13 = vmax.f32 %v226_v0, 0.0  ;;  %v231_v14 = vmax.f32 %v227_v1, 0.0  ;;  %v232_v21 = vmax.f32 %v228_v5, 0.0  ;;  %v289_v1 = vld [vmem:[#allocation2 + $0x8] sm:$0x3] }
  0x4b   :  { %v209_v17 = vsel %vm197_vm8, %v205_v7, 0.0  ;;  %v210_v19 = vsel %vm198_vm9, %v206_v8, 0.0  ;;  %v211_v20 = vsel %vm199_vm10, %v207_v9, 0.0  ;;  %v224_v27 = vadd.f32 %v220_v3, %v172_v43  ;;  %v290_v2 = vld [vmem:[#allocation2 + $0x18] sm:$0x3] }
  0x4c   :  { %v212_v22 = vsel %vm200_vm11, %v208_v11, 0.0  ;;  %v213_v23 = vadd.f32 %v209_v17, %v161_v41  ;;  %v214_v25 = vadd.f32 %v210_v19, %v162_v42  ;;  %v215_v29 = vadd.f32 %v211_v20, %v163_v44 }
  0x4d   :  { %v216_v26 = vadd.f32 %v212_v22, %v164_v37  ;;  %v233_v30 = vmin.f32 %v229_v6, 10.0  ;;  %v234_v33 = vmin.f32 %v230_v13, 10.0  ;;  %v235_v34 = vmin.f32 %v231_v14, 10.0 }
  0x4e   :  { %v241_v35 = vmax.f32 %v237_v15, 0.0  ;;  %v242_v38 = vmax.f32 %v238_v16, 0.0  ;;  %v243_v39 = vmax.f32 %v239_v18, 0.0  ;;  %v236_v40 = vmin.f32 %v232_v21, 10.0  ;;  %v329_v18 = vld [vmem:[#allocation5 + $0xa] sm:$0x3] }
  0x4f   :  { %v244_v36 = vmax.f32 %v240_v24, 0.0  ;;  %vm249_vm12 = vcmp.gt.f32.partialorder %v233_v30, 0.0001  ;;  %vm250_vm13 = vcmp.gt.f32.partialorder %v234_v33, 0.0001  ;;  %v281_v60 = vmax.f32 %v277_v32, 0.0 }
  0x50   :  { %v245_v45 = vmin.f32 %v241_v35, 10.0  ;;  %v246_v46 = vmin.f32 %v242_v38, 10.0  ;;  %v247_v47 = vmin.f32 %v243_v39, 10.0  ;;  %vm251_vm14 = vcmp.gt.f32.partialorder %v235_v34, 0.0001 }
  0x51   :  { %v248_v41 = vmin.f32 %v244_v36, 10.0  ;;  %vm252_vm15 = vcmp.gt.f32.partialorder %v236_v40, 0.0001  ;;  %v269_v42 = vsel %vm249_vm12, 1.0, %v684_v31  ;;  %v270_v43 = vsel %vm250_vm13, 1.0, %v684_v31 }
  0x52   :  { %v253_v44 = vsub.f32 %v245_v45, %v233_v30  ;;  %v254_v37 = vsub.f32 %v246_v46, %v234_v33  ;;  %v255_v48 = vsub.f32 %v247_v47, %v235_v34  ;;  %v271_v49 = vsel %vm251_vm14, 1.0, %v684_v31  ;;  %v330_v39 = vld [vmem:[#allocation5 + $0x1a] sm:$0x3]  ;;  %v331_v32 = vld [vmem:[#allocation5 + $0x2a] sm:$0x3] }
  0x53   :  { %v256_v52 = vsub.f32 %v248_v41, %v236_v40  ;;  %v272_v55 = vsel %vm252_vm15, 1.0, %v684_v31  ;;  %v273_v56 = vadd.f32 %v269_v42, %v221_v4  ;;  %v274_v58 = vadd.f32 %v270_v43, %v222_v10  ;;  %v291_v4 = vld [vmem:[#allocation2 + $0x28] sm:$0x3]  ;;  %v292_v10 = vld [vmem:[#allocation2 + $0x38] sm:$0x3] }
  0x54   :  { %v257_v53 = vmul.f32 %v253_v44, %v253_v44  ;;  %v258_v54 = vmul.f32 %v254_v37, %v254_v37  ;;  %v259_v57 = vmul.f32 %v255_v48, %v255_v48  ;;  %v275_v62 = vadd.f32 %v271_v49, %v223_v12  ;;  %v332_v46 = vld [vmem:[#allocation5 + $0x3a] sm:$0x3] }
  0x55   :  { %v260_v61 = vmul.f32 %v256_v52, %v256_v52  ;;  %v282_v63 = vmax.f32 %v278_v50, 0.0  ;;  %v283_v0 = vmax.f32 %v279_v51, 0.0  ;;  %v284_v7 = vmax.f32 %v280_v59, 0.0  ;;  %v341_v51 = vld [vmem:[#allocation2 + $0xa] sm:$0x3] }
  0x56   :  { %v261_v3 = vsel %vm249_vm12, %v257_v53, 0.0  ;;  %v262_v5 = vsel %vm250_vm13, %v258_v54, 0.0  ;;  %v263_v6 = vsel %vm251_vm14, %v259_v57, 0.0  ;;  %v276_v13 = vadd.f32 %v272_v55, %v224_v27  ;;  %v342_v52 = vld [vmem:[#allocation2 + $0x1a] sm:$0x3] }
  0x57   :  { %v264_v8 = vsel %vm252_vm15, %v260_v61, 0.0  ;;  %v265_v9 = vadd.f32 %v261_v3, %v213_v23  ;;  %v266_v11 = vadd.f32 %v262_v5, %v214_v25  ;;  %v267_v14 = vadd.f32 %v263_v6, %v215_v29 }
  0x58   :  { %v268_v12 = vadd.f32 %v264_v8, %v216_v26  ;;  %v285_v15 = vmin.f32 %v281_v60, 10.0  ;;  %v286_v16 = vmin.f32 %v282_v63, 10.0  ;;  %v287_v17 = vmin.f32 %v283_v0, 10.0 }
  0x59   :  { %v293_v19 = vmax.f32 %v289_v1, 0.0  ;;  %v294_v20 = vmax.f32 %v290_v2, 0.0  ;;  %v295_v21 = vmax.f32 %v291_v4, 0.0  ;;  %v288_v22 = vmin.f32 %v284_v7, 10.0  ;;  %v381_v4 = vld [vmem:[#allocation5 + $0xc] sm:$0x3] }
  0x5a   :  { %v296_v24 = vmax.f32 %v292_v10, 0.0  ;;  %vm301_vm0 = vcmp.gt.f32.partialorder %v285_v15, 0.0001  ;;  %vm302_vm1 = vcmp.gt.f32.partialorder %v286_v16, 0.0001  ;;  %v333_v47 = vmax.f32 %v329_v18, 0.0 }
  0x5b   :  { %v297_v30 = vmin.f32 %v293_v19, 10.0  ;;  %v298_v33 = vmin.f32 %v294_v20, 10.0  ;;  %v299_v34 = vmin.f32 %v295_v21, 10.0  ;;  %vm303_vm2 = vcmp.gt.f32.partialorder %v287_v17, 0.0001 }
  0x5c   :  { %v300_v23 = vmin.f32 %v296_v24, 10.0  ;;  %vm304_vm3 = vcmp.gt.f32.partialorder %v288_v22, 0.0001  ;;  %v321_v25 = vsel %vm301_vm0, 1.0, %v684_v31  ;;  %v322_v27 = vsel %vm302_vm1, 1.0, %v684_v31 }
  0x5d   :  { %v305_v29 = vsub.f32 %v297_v30, %v285_v15  ;;  %v306_v26 = vsub.f32 %v298_v33, %v286_v16  ;;  %v307_v35 = vsub.f32 %v299_v34, %v287_v17  ;;  %v323_v38 = vsel %vm303_vm2, 1.0, %v684_v31  ;;  %v382_v21 = vld [vmem:[#allocation5 + $0x1c] sm:$0x3]  ;;  %v383_v18 = vld [vmem:[#allocation5 + $0x2c] sm:$0x3] }
  0x5e   :  { %v308_v40 = vsub.f32 %v300_v23, %v288_v22  ;;  %v324_v36 = vsel %vm304_vm3, 1.0, %v684_v31  ;;  %v325_v45 = vadd.f32 %v321_v25, %v273_v56  ;;  %v326_v44 = vadd.f32 %v322_v27, %v274_v58  ;;  %v343_v56 = vld [vmem:[#allocation2 + $0x2a] sm:$0x3]  ;;  %v344_v58 = vld [vmem:[#allocation2 + $0x3a] sm:$0x3] }
  0x5f   :  { %v309_v41 = vmul.f32 %v305_v29, %v305_v29  ;;  %v310_v42 = vmul.f32 %v306_v26, %v306_v26  ;;  %v311_v43 = vmul.f32 %v307_v35, %v307_v35  ;;  %v327_v48 = vadd.f32 %v323_v38, %v275_v62  ;;  %v384_v33 = vld [vmem:[#allocation5 + $0x3c] sm:$0x3] }
  0x60   :  { %v312_v37 = vmul.f32 %v308_v40, %v308_v40  ;;  %v334_v49 = vmax.f32 %v330_v39, 0.0  ;;  %v335_v50 = vmax.f32 %v331_v32, 0.0  ;;  %v336_v53 = vmax.f32 %v332_v46, 0.0  ;;  %v393_v32 = vld [vmem:[#allocation2 + $0xc] sm:$0x3] }
  0x61   :  { %v313_v55 = vsel %vm301_vm0, %v309_v41, 0.0  ;;  %v314_v59 = vsel %vm302_vm1, %v310_v42, 0.0  ;;  %v315_v60 = vsel %vm303_vm2, %v311_v43, 0.0  ;;  %v328_v63 = vadd.f32 %v324_v36, %v276_v13  ;;  %v394_v40 = vld [vmem:[#allocation2 + $0x1c] sm:$0x3] }
  0x62   :  { %v316_v54 = vsel %vm304_vm3, %v312_v37, 0.0  ;;  %v317_v57 = vadd.f32 %v313_v55, %v265_v9  ;;  %v318_v61 = vadd.f32 %v314_v59, %v266_v11  ;;  %v319_v0 = vadd.f32 %v315_v60, %v267_v14 }
  0x63   :  { %v320_v62 = vadd.f32 %v316_v54, %v268_v12  ;;  %v337_v1 = vmin.f32 %v333_v47, 10.0  ;;  %v338_v2 = vmin.f32 %v334_v49, 10.0  ;;  %v339_v3 = vmin.f32 %v335_v50, 10.0 }
  0x64   :  { %v345_v5 = vmax.f32 %v341_v51, 0.0  ;;  %v346_v6 = vmax.f32 %v342_v52, 0.0  ;;  %v347_v7 = vmax.f32 %v343_v56, 0.0  ;;  %v340_v8 = vmin.f32 %v336_v53, 10.0  ;;  %v433_v56 = vld [vmem:[#allocation5 + $0xe] sm:$0x3] }
  0x65   :  { %v348_v10 = vmax.f32 %v344_v58, 0.0  ;;  %vm353_vm4 = vcmp.gt.f32.partialorder %v337_v1, 0.0001  ;;  %vm354_vm5 = vcmp.gt.f32.partialorder %v338_v2, 0.0001  ;;  %v385_v34 = vmax.f32 %v381_v4, 0.0 }
  0x66   :  { %v349_v15 = vmin.f32 %v345_v5, 10.0  ;;  %v350_v16 = vmin.f32 %v346_v6, 10.0  ;;  %v351_v17 = vmin.f32 %v347_v7, 10.0  ;;  %vm355_vm6 = vcmp.gt.f32.partialorder %v339_v3, 0.0001 }
  0x67   :  { %v352_v9 = vmin.f32 %v348_v10, 10.0  ;;  %vm356_vm7 = vcmp.gt.f32.partialorder %v340_v8, 0.0001  ;;  %v373_v11 = vsel %vm353_vm4, 1.0, %v684_v31  ;;  %v374_v13 = vsel %vm354_vm5, 1.0, %v684_v31 }
  0x68   :  { %v357_v14 = vsub.f32 %v349_v15, %v337_v1  ;;  %v358_v12 = vsub.f32 %v350_v16, %v338_v2  ;;  %v359_v19 = vsub.f32 %v351_v17, %v339_v3  ;;  %v375_v20 = vsel %vm355_vm6, 1.0, %v684_v31  ;;  %v434_v7 = vld [vmem:[#allocation5 + $0x1e] sm:$0x3]  ;;  %v435_v4 = vld [vmem:[#allocation5 + $0x2e] sm:$0x3] }
  0x69   :  { %v360_v22 = vsub.f32 %v352_v9, %v340_v8  ;;  %v376_v24 = vsel %vm356_vm7, 1.0, %v684_v31  ;;  %v377_v30 = vadd.f32 %v373_v11, %v325_v45  ;;  %v378_v29 = vadd.f32 %v374_v13, %v326_v44  ;;  %v395_v45 = vld [vmem:[#allocation2 + $0x2c] sm:$0x3]  ;;  %v396_v44 = vld [vmem:[#allocation2 + $0x3c] sm:$0x3] }
  0x6a   :  { %v361_v23 = vmul.f32 %v357_v14, %v357_v14  ;;  %v362_v25 = vmul.f32 %v358_v12, %v358_v12  ;;  %v363_v27 = vmul.f32 %v359_v19, %v359_v19  ;;  %v379_v35 = vadd.f32 %v375_v20, %v327_v48  ;;  %v436_v16 = vld [vmem:[#allocation5 + $0x3e] sm:$0x3] }
  0x6b   :  { %v364_v26 = vmul.f32 %v360_v22, %v360_v22  ;;  %v386_v38 = vmax.f32 %v382_v21, 0.0  ;;  %v387_v39 = vmax.f32 %v383_v18, 0.0  ;;  %v388_v41 = vmax.f32 %v384_v33, 0.0  ;;  %v445_v18 = vld [vmem:[#allocation2 + $0xe] sm:$0x3] }
  0x6c   :  { %v365_v36 = vsel %vm353_vm4, %v361_v23, 0.0  ;;  %v366_v46 = vsel %vm354_vm5, %v362_v25, 0.0  ;;  %v367_v47 = vsel %vm355_vm6, %v363_v27, 0.0  ;;  %v380_v49 = vadd.f32 %v376_v24, %v328_v63  ;;  %v446_v22 = vld [vmem:[#allocation2 + $0x1e] sm:$0x3] }
  0x6d   :  { %v368_v42 = vsel %vm356_vm7, %v364_v26, 0.0  ;;  %v369_v43 = vadd.f32 %v365_v36, %v317_v57  ;;  %v370_v37 = vadd.f32 %v366_v46, %v318_v61  ;;  %v371_v50 = vadd.f32 %v367_v47, %v319_v0 }
  0x6e   :  { %v372_v48 = vadd.f32 %v368_v42, %v320_v62  ;;  %v389_v51 = vmin.f32 %v385_v34, 10.0  ;;  %v390_v52 = vmin.f32 %v386_v38, 10.0  ;;  %v391_v55 = vmin.f32 %v387_v39, 10.0 }
  0x6f   :  { %v397_v59 = vmax.f32 %v393_v32, 0.0  ;;  %v398_v60 = vmax.f32 %v394_v40, 0.0  ;;  %v399_v53 = vmax.f32 %v395_v45, 0.0  ;;  %v392_v54 = vmin.f32 %v388_v41, 10.0 }
  0x70   :  { %v400_v58 = vmax.f32 %v396_v44, 0.0  ;;  %vm405_vm8 = vcmp.gt.f32.partialorder %v389_v51, 0.0001  ;;  %vm406_vm9 = vcmp.gt.f32.partialorder %v390_v52, 0.0001  ;;  %v437_v17 = vmax.f32 %v433_v56, 0.0 }
  0x71   :  { %v401_v1 = vmin.f32 %v397_v59, 10.0  ;;  %v402_v2 = vmin.f32 %v398_v60, 10.0  ;;  %v403_v3 = vmin.f32 %v399_v53, 10.0  ;;  %vm407_vm10 = vcmp.gt.f32.partialorder %v391_v55, 0.0001 }
  0x72   :  { %v404_v57 = vmin.f32 %v400_v58, 10.0  ;;  %vm408_vm11 = vcmp.gt.f32.partialorder %v392_v54, 0.0001  ;;  %v425_v61 = vsel %vm405_vm8, 1.0, %v684_v31  ;;  %v426_v63 = vsel %vm406_vm9, 1.0, %v684_v31 }
  0x73   :  { %v409_v0 = vsub.f32 %v401_v1, %v389_v51  ;;  %v410_v62 = vsub.f32 %v402_v2, %v390_v52  ;;  %v411_v5 = vsub.f32 %v403_v3, %v391_v55  ;;  %v427_v6 = vsel %vm407_vm10, 1.0, %v684_v31 }
  0x74   :  { %v412_v8 = vsub.f32 %v404_v57, %v392_v54  ;;  %v428_v10 = vsel %vm408_vm11, 1.0, %v684_v31  ;;  %v429_v15 = vadd.f32 %v425_v61, %v377_v30  ;;  %v430_v14 = vadd.f32 %v426_v63, %v378_v29  ;;  %v447_v30 = vld [vmem:[#allocation2 + $0x2e] sm:$0x3]  ;;  %v448_v29 = vld [vmem:[#allocation2 + $0x3e] sm:$0x3] }
  0x75   :  { %v413_v9 = vmul.f32 %v409_v0, %v409_v0  ;;  %v414_v11 = vmul.f32 %v410_v62, %v410_v62  ;;  %v415_v13 = vmul.f32 %v411_v5, %v411_v5  ;;  %v431_v19 = vadd.f32 %v427_v6, %v379_v35 }
  0x76   :  { %v416_v12 = vmul.f32 %v412_v8, %v412_v8  ;;  %v438_v20 = vmax.f32 %v434_v7, 0.0  ;;  %v439_v21 = vmax.f32 %v435_v4, 0.0  ;;  %v440_v23 = vmax.f32 %v436_v16, 0.0 }
  0x77   :  { %v417_v24 = vsel %vm405_vm8, %v413_v9, 0.0  ;;  %v418_v33 = vsel %vm406_vm9, %v414_v11, 0.0  ;;  %v419_v34 = vsel %vm407_vm10, %v415_v13, 0.0  ;;  %v432_v38 = vadd.f32 %v428_v10, %v380_v49 }
  0x78   :  { %v420_v25 = vsel %vm408_vm11, %v416_v12, 0.0  ;;  %v421_v27 = vadd.f32 %v417_v24, %v369_v43  ;;  %v422_v26 = vadd.f32 %v418_v33, %v370_v37  ;;  %v423_v39 = vadd.f32 %v419_v34, %v371_v50 }
  0x79   :  { %v424_v35 = vadd.f32 %v420_v25, %v372_v48  ;;  %v441_v32 = vmin.f32 %v437_v17, 10.0  ;;  %v442_v40 = vmin.f32 %v438_v20, 10.0  ;;  %v443_v36 = vmin.f32 %v439_v21, 10.0 }
  0x7a   :  { %v449_v46 = vmax.f32 %v445_v18, 0.0  ;;  %v450_v47 = vmax.f32 %v446_v22, 0.0  ;;  %v451_v41 = vmax.f32 %v447_v30, 0.0  ;;  %v444_v45 = vmin.f32 %v440_v23, 10.0 }
  0x7b   :  { %v452_v42 = vmax.f32 %v448_v29, 0.0  ;;  %vm457_vm12 = vcmp.gt.f32.partialorder %v441_v32, 0.0001  ;;  %vm458_vm13 = vcmp.gt.f32.partialorder %v442_v40, 0.0001 }
  0x7c   :  { %v453_v44 = vmin.f32 %v449_v46, 10.0  ;;  %v454_v51 = vmin.f32 %v450_v47, 10.0  ;;  %v455_v52 = vmin.f32 %v451_v41, 10.0  ;;  %vm459_vm14 = vcmp.gt.f32.partialorder %v443_v36, 0.0001 }
  0x7d   :  { %v456_v43 = vmin.f32 %v452_v42, 10.0  ;;  %vm460_vm15 = vcmp.gt.f32.partialorder %v444_v45, 0.0001  ;;  %v477_v37 = vsel %vm457_vm12, 1.0, %v684_v31  ;;  %v478_v49 = vsel %vm458_vm13, 1.0, %v684_v31 }
  0x7e   :  { %v461_v50 = vsub.f32 %v453_v44, %v441_v32  ;;  %v462_v48 = vsub.f32 %v454_v51, %v442_v40  ;;  %v463_v55 = vsub.f32 %v455_v52, %v443_v36  ;;  %v479_v59 = vsel %vm459_vm14, 1.0, %v684_v31 }
  0x7f   :  { %v464_v60 = vsub.f32 %v456_v43, %v444_v45  ;;  %v480_v53 = vsel %vm460_vm15, 1.0, %v684_v31  ;;  %v481_v56 = vadd.f32 %v477_v37, %v429_v15  ;;  %v482_v54 = vadd.f32 %v478_v49, %v430_v14 }
  0x80   :  { %v465_v58 = vmul.f32 %v461_v50, %v461_v50  ;;  %v466_v1 = vmul.f32 %v462_v48, %v462_v48  ;;  %v467_v2 = vmul.f32 %v463_v55, %v463_v55  ;;  %v483_v3 = vadd.f32 %v479_v59, %v431_v19 }
  0x81   :  { %v468_v57 = vmul.f32 %v464_v60, %v464_v60  ;;  %v484_v61 = vadd.f32 %v480_v53, %v432_v38  ;;  %v515_v63 = vcombine.low %v481_v56, %v482_v54 }
  0x82   :  { %v469_v0 = vsel %vm457_vm12, %v465_v58, 0.0  ;;  %v470_v62 = vsel %vm458_vm13, %v466_v1, 0.0  ;;  %v471_v5 = vsel %vm459_vm14, %v467_v2, 0.0 }
  0x83   :  { %v472_v6 = vsel %vm460_vm15, %v468_v57, 0.0  ;;  %v473_v7 = vadd.f32 %v469_v0, %v421_v27  ;;  %v474_v4 = vadd.f32 %v470_v62, %v422_v26  ;;  %v475_v31 = vadd.f32 %v471_v5, %v423_v39 }
  0x84   :  { %v476_v8 = vadd.f32 %v472_v6, %v424_v35  ;;  %v516_v10 = vcombine.low %v483_v3, %v484_v61  ;;  %v523_v15 = vrot.slane %v515_v63, %v733_v28 }
  0x85   :  { %v490_v16 = vcombine.low %v473_v7, %v474_v4 }
  0x86   :  { %v491_v17 = vcombine.low %v475_v31, %v476_v8  ;;  %v530_v9 = vrot.slane %v516_v10, %v733_v28 }
  0x87   :  { %v498_v11 = vrot.slane %v490_v16, %v733_v28 }
  0x88   :  { %v505_v13 = vrot.slane %v491_v17, %v733_v28  ;;  %v531_v14 = vcombine.low %v523_v15, %v530_v9 }
  0x8a   :  { %v506_v12 = vcombine.low %v498_v11, %v505_v13  ;;  %534 = vst [vmem:[#allocation8] sm:$0xff] %v531_v14 }
  0x8c   :  { %509 = vst [vmem:[#allocation7] sm:$0xff] %v506_v12 }
  0x8d   :  { %539 = vsyncadd [#allocation4], 96  ;;  %s685_s1 = smov [#allocation7]  }
  0x8e   :  { %s540_s12 = sshll.u32 %s685_s1, 4  ;;  %s541_s12 = int_to_ptr.vmem [resolvable:$true] %s540_s12 }
  0x8f   :  { %s627_s13 = scalar_lea.vmem %s541_s12, 32  ;;  %s631_s14 = scalar_lea.vmem %s541_s12, 128 }
  0x90   :  { %p628_p2 = scmp.ne.s32.totalorder %s541_s12, %s627_s13  ;;  %p632_p3 = scmp.lt.s32.totalorder %s541_s12, %s541_s12 }
  0x91   :  { %p633_p4 = scmp.lt.s32.totalorder %s631_s14, %s627_s13 }
  0x93   :  { %p634_p5 = por %p633_p4, %p632_p3 }
  0x95   :  { %p635_p6 = pnand %p634_p5, %p628_p2 }
  0x97   :  { %638 = shalt.err (!%p635_p6)
}
  0x98   :  { %s639_s17 = scalar_lea.hbm %s861_s2, 32 }
  0x99   :  { %p640_p7 = scmp.ne.s32.totalorder %s861_s2, %s639_s17  ;;  %p643_p8 = scmp.lt.u32.totalorder %s639_s17, %s861_s2 }
  0x9b   :  { %p645_p9 = pnand %p643_p8, %p640_p7 }
  0x9d   :  { %648 = shalt.err (!%p645_p9)
}
  0x9e   :  { %s686_s22 = smov 32   ;;  %s687_s23 = smov 2  }
  0x9f   :  { %546 = dma.vmem_to_hbm [thread:$0]  %s541_s12, 32, %s861_s2, [#allocation4], %s686_s22, %s686_s22, %s687_s23  }
  0xa0   :  { %551 = vsyncadd [#allocation9], 96  ;;  %s688_s26 = smov [#allocation8]  }
  0xa1   :  { %s552_s27 = sshll.u32 %s688_s26, 4  ;;  %s553_s27 = int_to_ptr.vmem [resolvable:$true] %s552_s27 }
  0xa2   :  { %s649_s28 = scalar_lea.vmem %s553_s27, 32  ;;  %s653_s29 = scalar_lea.vmem %s553_s27, 128 }
  0xa3   :  { %p650_p10 = scmp.ne.s32.totalorder %s553_s27, %s649_s28  ;;  %p654_p11 = scmp.lt.s32.totalorder %s553_s27, %s553_s27 }
  0xa4   :  { %p655_p12 = scmp.lt.s32.totalorder %s653_s29, %s649_s28 }
  0xa6   :  { %p656_p13 = por %p655_p12, %p654_p11 }
  0xa8   :  { %p657_p0 = pnand %p656_p13, %p650_p10 }
  0xaa   :  { %660 = shalt.err (!%p657_p0)
}
  0xab   :  { %s661_s5 = scalar_lea.hbm %s862_s3, 32 }
  0xac   :  { %p662_p1 = scmp.ne.s32.totalorder %s862_s3, %s661_s5  ;;  %p665_p2 = scmp.lt.u32.totalorder %s661_s5, %s862_s3 }
  0xae   :  { %p667_p3 = pnand %p665_p2, %p662_p1 }
  0xb0   :  { %670 = shalt.err (!%p667_p3)
}
  0xb1   :  { %558 = dma.vmem_to_hbm [thread:$0]  %s553_s27, 32, %s862_s3, [#allocation9], %s686_s22, %s686_s22, %s687_s23  }
  0xb2   :  { %675 = dma.done.wait [#allocation4], 128  }
  0xb3   :  { %676 = vsyncadd [#allocation4], 4294967168 }
  0xb4   :  { %677 = dma.done.wait [#allocation9], 128  }
  0xb5   :  { %678 = vsyncadd [#allocation9], 4294967168 }
  0xb6   :  { %565 = vsyncpa [#allocation3], 1 }
  0xb7   :  { %566 = vsyncpa [#allocation6], 1 }
  0xb8   :  { %567 = vsyncpa [#allocation4], 1 }
  0xb9   :  { %568 = vsyncpa [#allocation9], 1 }

</bundles_post_ra>
